<compile_context>
chip_gen: v5e
topology: v5e:2x2
jax: 0.10.0
libtpu: 0.0.40
codegen_flags: <defaults>
</compile_context>

<pallas_src>
import jax
import jax.numpy as jnp
from jax.experimental import pallas as pl
from jax.experimental.pallas import tpu as pltpu


def _to_tensor_kernel(x_ref, sb_ref, o_ref):
    # x_ref:  (rows_blk, hw_blk) raw uint8 image bytes for several (n, c) rows
    # sb_ref: (rows_blk, 2)      per-row [scale, bias] = [1/(255*std), -mean/std]
    sb = sb_ref[...]
    scale = sb[:, 0:1]
    bias = sb[:, 1:2]
    xf = x_ref[...].astype(jnp.float32)
    o_ref[...] = (xf * scale + bias).astype(o_ref.dtype)


def _choose_blocks(rows, hw, target_out_bytes, out_elem_bytes):
    """Pick (rows_blk, hw_blk) so one step writes ~target_out_bytes of output.

    Legality: hw_blk is a multiple of 128 or the full hw extent; rows_blk is a
    multiple of 8 (preferably 32 for uint8 packing) or the full rows extent.
    """
    target_elems = max(128, target_out_bytes // out_elem_bytes)

    rows_min = rows if rows < 8 else 8

    # Lane (hw) block: full extent if it fits the budget, else multiple of 128.
    hw_budget = max(128, target_elems // rows_min)
    if hw <= hw_budget:
        hw_blk = hw
    else:
        hw_blk = max(128, (min(hw, hw_budget) // 128) * 128)

    # Sublane (rows) block for the remaining budget.
    rows_budget = max(1, target_elems // hw_blk)
    if rows_budget >= rows:
        rows_blk = rows
    elif rows_budget >= 32:
        rows_blk = (rows_budget // 32) * 32   # uint8 packs 32 rows per vreg
    elif rows_budget >= 8:
        rows_blk = (rows_budget // 8) * 8
    else:
        rows_blk = rows_min

    # Prefer a rows_blk that divides rows evenly (no ragged/masked last step).
    if 8 <= rows_blk < rows and rows % rows_blk != 0:
        for cand in range(rows_blk, 7, -8):
            if rows % cand == 0:
                rows_blk = cand
                break

    # v7x megacore: guarantee >= 2 parallel grid steps whenever splittable.
    n_steps = pl.cdiv(rows, rows_blk) * pl.cdiv(hw, hw_blk)
    if n_steps < 2:
        if rows >= 16 and rows % 16 == 0:
            rows_blk = rows // 2              # still a multiple of 8
        elif rows > 8:
            rows_blk = 8
        elif hw >= 256:
            hw_blk = ((-(-hw // 2) + 127) // 128) * 128  # ~half, 128-aligned

    return rows_blk, hw_blk


def to_tensor(x, mean, std, *, out_dtype=jnp.float32,
              target_block_bytes=4 << 20):
    """Normalize an NCHW uint8 image batch exactly like the PyTorch ToTensor.

    out_dtype=jnp.bfloat16 is the recommended fast path when downstream
    tolerates it (halves HBM writeback); float32 (default) matches PyTorch.
    """
    N, C, H, W = x.shape
    rows, hw = N * C, H * W

    mean = jnp.asarray(mean, dtype=jnp.float32).reshape(C)
    std = jnp.asarray(std, dtype=jnp.float32).reshape(C)

    # Fold the /255, -mean, /std chain into one affine (exact divides on host).
    scale = 1.0 / (255.0 * std)                             # (C,)
    bias = -mean / std                                      # (C,)
    sb = jnp.tile(jnp.stack([scale, bias], axis=-1), (N, 1))  # (rows, 2)

    # Lane-dense layout: spatial extent is the last (lane) dimension.
    x2 = x.reshape(rows, hw)

    out_elem_bytes = jnp.dtype(out_dtype).itemsize
    rows_blk, hw_blk = _choose_blocks(rows, hw, target_block_bytes,
                                      out_elem_bytes)
    grid = (pl.cdiv(rows, rows_blk), pl.cdiv(hw, hw_blk))

    out = pl.pallas_call(
        _to_tensor_kernel,
        out_shape=jax.ShapeDtypeStruct((rows, hw), out_dtype),
        grid=grid,
        in_specs=[
            pl.BlockSpec((rows_blk, hw_blk), lambda i, j: (i, j)),
            pl.BlockSpec((rows_blk, 2), lambda i, j: (i, 0)),
        ],
        out_specs=pl.BlockSpec((rows_blk, hw_blk), lambda i, j: (i, j)),
        compiler_params=pltpu.CompilerParams(
            dimension_semantics=("parallel", "parallel"),
            # ~10 MiB actually used per step (double-buffered); 32 MiB fits
            # comfortably under v7x's 64 MiB physical VMEM as well.
            vmem_limit_bytes=32 * 1024 * 1024,
        ),
    )(x2, sb)

    return out.reshape(N, C, H, W)


if __name__ == "__main__":
    key = jax.random.PRNGKey(0)

    # Small synthetic "image" batch: batch=2, channels=4, spatial=16x16 (NCHW).
    N, C, H, W = 2, 4, 16, 16
    x = jax.random.randint(key, (N, C, H, W), 0, 256, dtype=jnp.int32).astype(
        jnp.uint8)

    # Deterministic per-channel mean / std buffers (module __init__ args).
    mean = jnp.array([0.485, 0.456, 0.406, 0.5], dtype=jnp.float32)
    std = jnp.array([0.229, 0.224, 0.225, 0.25], dtype=jnp.float32)

    out = to_tensor(x, mean, std)
    out = jax.block_until_ready(out)

    # Pure-JAX reference with the original (divide-based) semantics.
    ref = (x.astype(jnp.float32) / 255.0 - mean.reshape(1, C, 1, 1)) / std.reshape(
        1, C, 1, 1)
    assert out.shape == (N, C, H, W) and out.dtype == jnp.float32
    # Folded affine differs from the divide chain by a few f32 ULPs.
    assert jnp.allclose(out, ref, rtol=1e-5, atol=1e-5)

    print("KERNEL_OK")
</pallas_src>

<mosaic_0001>
module attributes {stable_mosaic.version = 11 : i64} {
  func.func @_to_tensor_kernel(%arg0: i32, %arg1: i32, %arg2: memref<8x128xi8, #tpu.memory_space<vmem>>, %arg3: memref<8x2xf32, #tpu.memory_space<vmem>>, %arg4: memref<8x128xf32, #tpu.memory_space<vmem>>) attributes {dimension_semantics = [#tpu.dimension_semantics<parallel>, #tpu.dimension_semantics<parallel>], iteration_bounds = array<i64: 1, 2>, scalar_prefetch = 0 : i64, scratch_operands = 0 : i64, tpu.core_type = #tpu.core_type<tc>, window_params = [{transform_indices = @transform_0, window_bounds = array<i64: 8, 128>}, {transform_indices = @transform_1, window_bounds = array<i64: 8, 2>}, {transform_indices = @transform_2, window_bounds = array<i64: 8, 128>}]} {
    %c0 = arith.constant 0 : index
    %c0_0 = arith.constant 0 : index
    %0 = vector.load %arg3[%c0, %c0_0] : memref<8x2xf32, #tpu.memory_space<vmem>>, vector<8x2xf32>
    %1 = vector.extract_strided_slice %0 {offsets = [0, 0], sizes = [8, 1], strides = [1, 1]} : vector<8x2xf32> to vector<8x1xf32>
    %2 = vector.extract_strided_slice %0 {offsets = [0, 1], sizes = [8, 1], strides = [1, 1]} : vector<8x2xf32> to vector<8x1xf32>
    %c0_1 = arith.constant 0 : index
    %c0_2 = arith.constant 0 : index
    %3 = vector.load %arg2[%c0_1, %c0_2] : memref<8x128xi8, #tpu.memory_space<vmem>>, vector<8x128xi8>
    %4 = arith.uitofp %3 : vector<8x128xi8> to vector<8x128xf32>
    %5 = vector.broadcast %1 : vector<8x1xf32> to vector<8x128xf32>
    %6 = arith.mulf %4, %5 : vector<8x128xf32>
    %7 = vector.broadcast %2 : vector<8x1xf32> to vector<8x128xf32>
    %8 = arith.addf %6, %7 : vector<8x128xf32>
    %c0_3 = arith.constant 0 : index
    %c0_4 = arith.constant 0 : index
    %9 = vector.load %arg4[%c0_3, %c0_4] : memref<8x128xf32, #tpu.memory_space<vmem>>, vector<8x128xf32>
    tpu.vector_store %arg4[%c0_3, %c0_4], %8 {strides = array<i32>} : memref<8x128xf32, #tpu.memory_space<vmem>>, vector<8x128xf32>,
    return
  }
  func.func @transform_0(%arg0: i32, %arg1: i32) -> (i32, i32) {
    %c0_i32 = arith.constant 0 : i32
    return %arg0, %arg1 : i32, i32
  }
  func.func @transform_1(%arg0: i32, %arg1: i32) -> (i32, i32) {
    %c0_i32 = arith.constant 0 : i32
    %c0_i32_0 = arith.constant 0 : i32
    return %arg0, %c0_i32 : i32, i32
  }
  func.func @transform_2(%arg0: i32, %arg1: i32) -> (i32, i32) {
    %c0_i32 = arith.constant 0 : i32
    return %arg0, %arg1 : i32, i32
  }
}

</mosaic_0001>

<bundles_post_ra>
// kernel: tpu_custom_call.1
= control target key start
LH: loop header
LB: loop body
LE: loop exit
PB: predicated region body
PF: predicated region fallthrough
CT: control target
= control target key end

     0   :  { %7 = vsyncpa [#allocation3], 0  ;;  %s577_s0 = inlined_call_operand.vmem [shape: u8[8,256], index: 0, kind: input, shape index: {}]   ;;  %s578_s1 = inlined_call_operand.vmem [shape: f32[8,2], index: 1, kind: input, shape index: {}]   ;;  %s579_s2 = inlined_call_operand.hbm [shape: f32[8,256], index: 2, kind: output, shape index: {}]  }
   0x1   :  { %9 = vsyncpa [#allocation3 + $0x1], 0  ;;  %s477_s9 = smov 0   ;;  %s479_s10 = smov 0  }
   0x2   :  { %s481_s11 = smov 0   ;;  %s483_s12 = smov 0  }
   0x3   :  { %s485_s13 = smov 0   ;;  %s487_s14 = smov 0  }
   0x4 LB: > { %s309_s15 = sadd.s32 4294967295, %s458_s14   ;;  %s310_s16 = sadd.s32 4294967294, %s458_s14   ;;  %s458_s14 = sphi %s487_s14, %s15_s14   ;;  %s454_s13 = sphi %s485_s13, %s586_s13   ;;  %s450_s12 = sphi %s483_s12, %s585_s12   ;;  %s446_s11 = sphi %s481_s11, %s584_s11   ;;  %s442_s10 = sphi %s479_s10, %s583_s10   ;;  %s438_s9 = sphi %s477_s9, %s582_s9  }
   0x5   : > { %s24_s17 = sadd.s32 1, %s454_s13  ;;  %s90_s18 = sadd.s32 1, %s446_s11 }
   0x6   : > { %p25_p0 = scmp.ge.s32.totalorder %s24_s17, 2  ;;  %p100_p1 = scmp.ne.s32.totalorder %s446_s11, %s442_s10 }
   0x7   : > { %p101_p2 = scmp.eq.s32.totalorder %s309_s15, 1  ;;  %p106_p3 = scmp.ne.s32.totalorder %s442_s10, %s438_s9 }
   0x8   : > { %s588_s17 = smov (%p25_p0, %s24_s17), 0  ;;  %p107_p5 = scmp.eq.s32.totalorder %s310_s16, 1 }
   0x9   : > { %p517_p4 = por %p101_p2, %p100_p1  ;;  %s86_s20 = ssub.s32 %s454_s13, %s588_s17 }
   0xa   : > { %p314_p6 = scmp.ge.s32.totalorder %s458_s14, 1  ;;  %p88_p7 = scmp.eq.s32.totalorder %s86_s20, 0 }
   0xb   : > { %p524_p8 = por %p107_p5, %p106_p3  ;;  %p143_p9 = scmp.lt.s32.totalorder %s458_s14, 3 }
   0xc   : > { %s530_s22 = scalar_select %p88_p7, %s446_s11, %s90_s18  }
   0xd   : > { %p144_p10 = pnand %p314_p6, %p143_p9 }
   0xe   : > { %p174_p11 = scmp.lt.s32.totalorder (!%p144_p10), %s450_s12, 1  ;;  %s169_s30 = sand.u32 (!%p144_p10), 1, %s442_s10  }
   0xf   : > { %147 = sbr.rel (%p144_p10) target bundleno = 151 (0x97), region = 28  ;;  %s315_s3 = sshll.u32 (!%p144_p10), %s169_s30, 3 }
  0x10   : > { %s318_s4 = sshll.u32 (!%p144_p10), %s450_s12, 3  ;;  %s171_s8 = scalar_lea.vmem (!%p144_p10), [#allocation2], %s315_s3 }
  0x11   : > { %s214_s7 = scalar_lea.hbm (!%p144_p10), %s579_s2, %s318_s4  ;;  %s216_s15 = sshll.u32 (!%p144_p10), %s171_s8, 4  ;;  %s217_s15 = int_to_ptr.vmem [resolvable:$true] %s216_s15 }
  0x12   : > { %s218_s16 = sshll.u32 (!%p144_p10), %s214_s7, 4  ;;  %s202_s18 = scalar_lea.sflag (!%p144_p10), [#allocation3], %s169_s30  ;;  %s219_s16 = int_to_ptr.hbm [resolvable:$true] %s218_s16 }
  0x13   : > { %s394_s20 = sshra.s32 (!%p144_p10), %s219_s16, 4  ;;  %s395_s20 = int_to_ptr.hbm [resolvable:$true] %s394_s20 }
  0x14   : > { %v184_v0 = vld [vmem:[%s578_s1] sm:$0xff]  ;;  %v460_v1 = vmov 0   ;;  %v461_v2 = vmov 1   ;;  %s175_s25 = scalar_select %p174_p11, %s450_s12, 1 }
  0x15   : > { %378 = vset.pattern.permute.xlu0 %v460_v1  ;;  %s396_s23 = scalar_lea.hbm %s395_s20, 8  ;;  %p401_p1 = scmp.lt.s32.totalorder %s395_s20, %s579_s2 }
  0x16   : > { %191 = vperm.xlu0 %378, %v184_v0   ;;  %s316_s26 = sshll.u32 %s175_s25, 1  ;;  %p397_p12 = scmp.ne.s32.totalorder %s395_s20, %s396_s23 }
  0x17   : > { %s179_s29 = scalar_lea.vmem %s577_s0, %s316_s26  ;;  %s400_s25 = scalar_lea.hbm %s579_s2, 16 }
  0x18   : > { %v185_v3 = vld [vmem:[%s179_s29] sm:$0x3]  ;;  %p398_p13 = pnand %p397_p12, %p517_p4  ;;  %p402_p2 = scmp.lt.s32.totalorder %s400_s25, %s396_s23 }
  0x19   : > { %v186_v4 = vunpack.c.0.s8 %v185_v3 }
  0x1a   : > { %p399_p0 = pneg %p398_p13  ;;  %p403_p3 = por %p402_p2, %p401_p1 }
  0x1b   : > { %v187_v6 = vand.u32 255, %v186_v4 }
  0x1c   : > { %p404_p5 = pnand %p403_p3, %p399_p0 }
  0x1d   : > { %v188_v7 = vcvt.s32.f32 %v187_v6 }
  0x1e   : > { %379 = vset.pattern.permute.xlu0 %v461_v2 }
  0x1f   : > { %196 = vperm.xlu0 %379, %v184_v0  }
  0x88   : > { %v192_v5 = vpop.permute.xlu0 %191 }
  0x89   : > { %v194_v8 = vmul.f32 %v192_v5, %v188_v7 }
  0x91   : > { %v197_v9 = vpop.permute.xlu0 %196 }
  0x92   : > { %v199_v10 = vadd.f32 %v197_v9, %v194_v8 }
  0x94   : > { %200 = vst [vmem:[%s171_s8] sm:$0xff] %v199_v10 }
  0x95   : > { %407 = shalt.err (!%p404_p5)
}
  0x96   : > { %321 = dma.vmem_to_hbm [thread:$0]  (%p517_p4), %s217_s15, 128, %s219_s16, %s202_s18  }
  0x97 PF: > { %p327_p6 = scmp.ge.s32.totalorder %s458_s14, 2  ;;  %s230_s28 = sand.u32 1, %s438_s9  }
  0x98   : > { %s231_s29 = scalar_lea.sflag [#allocation3], %s230_s28 }
  0x99   : > { %p324_p7 = pnand %p327_p6, %p524_p8 }
  0x9b   : > { %p325_p9 = pneg %p324_p7 }
  0x9d   : > { %433 = dma.done.wait (%p325_p9), %s231_s29, 128  }
  0x9e   : > { %435 = vsyncadd (%p325_p9), %s231_s29, 4294967168  ;;  %s15_s14 = sadd.s32 1, %s458_s14   ;;  %s582_s9 = smov %s442_s10 }
  0x9f   : > { %p12_p10 = scmp.ge.s32.totalorder %s15_s14, 4   ;;  %s583_s10 = smov %s446_s11 }
  0xa0   : > { %s584_s11 = smov %s530_s22  ;;  %s585_s12 = smov %s454_s13 }
  0xa1   : > { %s586_s13 = smov %s588_s17  ;;  %14 = sbr.rel (!%p12_p10) target bundleno = 4 (0x4), region = 66 }
  0xa6   :  { %237 = vsyncpa [#allocation3], 1 }
  0xa7   :  { %239 = vsyncpa [#allocation3 + $0x1], 1 }

</bundles_post_ra>
